<compile_context>
chip_gen: v7x
topology: tpu7x:2x2x1
jax: 0.10.0
libtpu: 0.0.40
codegen_flags: <defaults>
</compile_context>

<pallas_src>
import functools

import jax
import jax.numpy as jnp
from jax import lax
from jax.experimental import pallas as pl
from jax.experimental.pallas import tpu as pltpu

LATENT_DIM = 10
COND_DIM = 16
HIDDEN = 64
OUT_DIM = 2
BN_EPS = 1e-5
LEAK = 0.2

# Per-row VMEM estimate (bytes): z/bits/out blocks are lane-padded to 128
# (2 double-buffered bf16 inputs + 1 f32 output) plus ~2 KB of (tile_b, 64)
# f32/bf16 temporaries (h1, h1^2, a1, h2, a2) inside the kernel body.
_VMEM_BYTES_PER_ROW = 4096


def _leaky(h):
    # mul + max (2 VALU ops) instead of cmp + mul + select; valid for any sign of h.
    return jnp.maximum(h, LEAK * h)


def _bn_scale_shift(s, q, gamma, beta, inv_n):
    """Fused training-mode BN affine from accumulated sum / sum-of-squares."""
    mu = s * inv_n
    var = q * inv_n - mu * mu
    scale = gamma * lax.rsqrt(var + BN_EPS)
    shift = beta - mu * scale
    return scale, shift


# --------------------------------------------------------------------------------------
# Small-batch fast path: whole batch resident in one tile, single invocation.
# --------------------------------------------------------------------------------------
def _onepass_kernel(z_ref, bits_ref,
                    w1a_ref, w1b_ref, g1_ref, be1_ref,
                    w2_ref, g2_ref, be2_ref,
                    w3_ref, b3_ref,
                    o_ref, *, inv_n):
    h1 = (jnp.dot(z_ref[...], w1a_ref[...], preferred_element_type=jnp.float32)
          + jnp.dot(bits_ref[...], w1b_ref[...], preferred_element_type=jnp.float32))
    s1 = jnp.sum(h1, axis=0, keepdims=True)
    q1 = jnp.sum(h1 * h1, axis=0, keepdims=True)
    scale1, shift1 = _bn_scale_shift(s1, q1, g1_ref[...], be1_ref[...], inv_n)
    a1 = _leaky(h1 * scale1 + shift1).astype(jnp.bfloat16)

    h2 = jnp.dot(a1, w2_ref[...], preferred_element_type=jnp.float32)
    s2 = jnp.sum(h2, axis=0, keepdims=True)
    q2 = jnp.sum(h2 * h2, axis=0, keepdims=True)
    scale2, shift2 = _bn_scale_shift(s2, q2, g2_ref[...], be2_ref[...], inv_n)
    a2 = _leaky(h2 * scale2 + shift2).astype(jnp.bfloat16)

    out = jnp.dot(a2, w3_ref[...], preferred_element_type=jnp.float32) + b3_ref[...]
    o_ref[...] = out.astype(o_ref.dtype)


# --------------------------------------------------------------------------------------
# Streaming path: 3 full-batch sweeps (BN1 stats / BN2 stats / apply + write) so BN
# statistics cover the full batch while only (tile_b, *) blocks live in VMEM.
# --------------------------------------------------------------------------------------
def _streaming_kernel(z_ref, bits_ref,
                      w1a_ref, w1b_ref, g1_ref, be1_ref,
                      w2_ref, g2_ref, be2_ref,
                      w3_ref, b3_ref,
                      o_ref,
                      sum1, ss1, sum2, ss2, *, inv_n):
    phase = pl.program_id(0)   # 0: BN1 stats, 1: BN2 stats, 2: apply + write
    tile = pl.program_id(1)    # batch tile

    @pl.when(jnp.logical_and(phase == 0, tile == 0))
    def _():
        sum1[...] = jnp.zeros_like(sum1)
        ss1[...] = jnp.zeros_like(ss1)
        sum2[...] = jnp.zeros_like(sum2)
        ss2[...] = jnp.zeros_like(ss2)

    # Layer-1 pre-activation (needed by every phase).  Pre-BN bias is dropped: a
    # per-feature constant added before training-mode BN is cancelled exactly by the
    # mean subtraction.
    h1 = (jnp.dot(z_ref[...], w1a_ref[...], preferred_element_type=jnp.float32)
          + jnp.dot(bits_ref[...], w1b_ref[...], preferred_element_type=jnp.float32))

    # TODO(synk): if profiling shows VALU saturated at large tiles, move these column
    # sums onto the idle MXU (ones(1,T) @ h1 / ones(1,T) @ h1*h1).
    @pl.when(phase == 0)
    def _():
        sum1[...] += jnp.sum(h1, axis=0, keepdims=True)
        ss1[...] += jnp.sum(h1 * h1, axis=0, keepdims=True)

    @pl.when(phase == 1)
    def _():
        scale1, shift1 = _bn_scale_shift(sum1[...], ss1[...],
                                         g1_ref[...], be1_ref[...], inv_n)
        a1 = _leaky(h1 * scale1 + shift1).astype(jnp.bfloat16)
        h2 = jnp.dot(a1, w2_ref[...], preferred_element_type=jnp.float32)
        sum2[...] += jnp.sum(h2, axis=0, keepdims=True)
        ss2[...] += jnp.sum(h2 * h2, axis=0, keepdims=True)

    @pl.when(phase == 2)
    def _():
        scale1, shift1 = _bn_scale_shift(sum1[...], ss1[...],
                                         g1_ref[...], be1_ref[...], inv_n)
        a1 = _leaky(h1 * scale1 + shift1).astype(jnp.bfloat16)
        h2 = jnp.dot(a1, w2_ref[...], preferred_element_type=jnp.float32)
        scale2, shift2 = _bn_scale_shift(sum2[...], ss2[...],
                                         g2_ref[...], be2_ref[...], inv_n)
        a2 = _leaky(h2 * scale2 + shift2).astype(jnp.bfloat16)
        out = jnp.dot(a2, w3_ref[...], preferred_element_type=jnp.float32) + b3_ref[...]
        o_ref[...] = out.astype(o_ref.dtype)


# --------------------------------------------------------------------------------------
# Host wrapper
# --------------------------------------------------------------------------------------
def _vmem_capacity_bytes():
    try:
        return int(pltpu.get_tpu_info().vmem_capacity_bytes)
    except Exception:
        return 64 << 20  # conservative default (v7x per-core physical VMEM)


def _pick_tile_b(batch, budget_bytes):
    max_rows = max(budget_bytes // _VMEM_BYTES_PER_ROW, 16)
    # bf16 inputs pack 16 rows per sublane group -> keep tiles a multiple of 16.
    for cand in (8192, 4096, 2048, 1024, 512, 256, 128, 64, 32, 16):
        if cand <= max_rows and batch % cand == 0:
            return cand
    return batch  # ragged / tiny batch: one resident tile (full-array block is legal)


def generator_forward(z, bits, params, *, tile_b=None):
    B = z.shape[0]
    # bits are exact in bf16; z is latent noise so the bf16 cast is harmless, and it
    # halves the dominant streaming HBM read.
    z = z.astype(jnp.bfloat16)
    bits = bits.astype(jnp.bfloat16)

    cap = _vmem_capacity_bytes()
    vmem_limit = min(int(cap * 3 // 4), 100 << 20)  # above scoped defaults, headroom kept

    if tile_b is None:
        tile_b = _pick_tile_b(B, max(vmem_limit - (4 << 20), 1 << 20))
    if B % tile_b != 0:
        tile_b = B
    n_tiles = B // tile_b

    # Split W1 along its input dim once (tiny weight slice) -> no activation concat.
    w1a = params["w1"][:LATENT_DIM].astype(jnp.bfloat16)    # (10, 64)
    w1b = params["w1"][LATENT_DIM:].astype(jnp.bfloat16)    # (16, 64)
    w2 = params["w2"].astype(jnp.bfloat16)
    w3 = params["w3"].astype(jnp.bfloat16)

    operands = (z, bits, w1a, w1b,
                params["g1"], params["be1"], w2, params["g2"], params["be2"],
                w3, params["b3"])

    weight_block_shapes = [
        (LATENT_DIM, HIDDEN), (COND_DIM, HIDDEN), (1, HIDDEN), (1, HIDDEN),
        (HIDDEN, HIDDEN), (1, HIDDEN), (1, HIDDEN), (HIDDEN, OUT_DIM), (1, OUT_DIM)]

    inv_n = 1.0 / float(B)

    if n_tiles == 1:
        # Single-pass small-batch kernel: one invocation, one output write.
        const1 = lambda i: (0, 0)
        in_specs = ([pl.BlockSpec((B, LATENT_DIM), const1),
                     pl.BlockSpec((B, COND_DIM), const1)]
                    + [pl.BlockSpec(s, const1) for s in weight_block_shapes])
        return pl.pallas_call(
            functools.partial(_onepass_kernel, inv_n=inv_n),
            out_shape=jax.ShapeDtypeStruct((B, OUT_DIM), jnp.float32),
            grid=(1,),
            in_specs=in_specs,
            out_specs=pl.BlockSpec((B, OUT_DIM), const1),
            compiler_params=pltpu.CompilerParams(
                dimension_semantics=("arbitrary",),
                vmem_limit_bytes=vmem_limit),
        )(*operands)

    batch_map = lambda p, i: (i, 0)
    const_map = lambda p, i: (0, 0)
    # Output block index only advances in phase 2 -> phases 0/1 never trigger stale
    # output writebacks to HBM.
    out_map = lambda p, i: (jnp.where(p == 2, i, 0), 0)

    in_specs = ([pl.BlockSpec((tile_b, LATENT_DIM), batch_map),
                 pl.BlockSpec((tile_b, COND_DIM), batch_map)]
                + [pl.BlockSpec(s, const_map) for s in weight_block_shapes])

    # Advisory cost hint (phase-gated compute: layer1 x3, layer2 x2, layer3 x1).
    flops = int(2 * B * (3 * (LATENT_DIM + COND_DIM) * HIDDEN
                         + 2 * HIDDEN * HIDDEN + HIDDEN * OUT_DIM))
    bytes_accessed = int(3 * B * (LATENT_DIM + COND_DIM) * 2 + B * OUT_DIM * 4
                         + 2 * ((LATENT_DIM + COND_DIM) * HIDDEN + HIDDEN * HIDDEN
                                + HIDDEN * OUT_DIM)
                         + 4 * (4 * HIDDEN + OUT_DIM))
    transcendentals = int(n_tiles * 3 * HIDDEN)

    return pl.pallas_call(
        functools.partial(_streaming_kernel, inv_n=inv_n),
        out_shape=jax.ShapeDtypeStruct((B, OUT_DIM), jnp.float32),
        grid=(3, n_tiles),
        in_specs=in_specs,
        out_specs=pl.BlockSpec((tile_b, OUT_DIM), out_map),
        scratch_shapes=[pltpu.VMEM((1, HIDDEN), jnp.float32) for _ in range(4)],
        compiler_params=pltpu.CompilerParams(
            # Both axes sequential: phase ordering is required and the tile axis carries
            # the BN-stats reduction held in VMEM scratch.
            # TODO(synk): on v7x, split the batch across both TensorCores with per-core
            # partial sums and a cross-core combine before the apply phases.
            dimension_semantics=("arbitrary", "arbitrary"),
            vmem_limit_bytes=vmem_limit),
        cost_estimate=pl.CostEstimate(
            flops=flops,
            transcendentals=transcendentals,
            bytes_accessed=bytes_accessed),
    )(*operands)


# --------------------------------------------------------------------------------------
# Parameters and references
# --------------------------------------------------------------------------------------
def init_params(key):
    """Deterministic synthetic parameters (PyTorch-like init, weights pre-transposed)."""
    ks = jax.random.split(key, 6)
    d_in = LATENT_DIM + COND_DIM

    def lin(kw, kb, fan_in, fan_out):
        bound = 1.0 / jnp.sqrt(fan_in)
        w = jax.random.uniform(kw, (fan_in, fan_out), jnp.float32, -bound, bound)
        b = jax.random.uniform(kb, (1, fan_out), jnp.float32, -bound, bound)
        return w, b

    w1, b1 = lin(ks[0], ks[1], d_in, HIDDEN)
    w2, b2 = lin(ks[2], ks[3], HIDDEN, HIDDEN)
    w3, b3 = lin(ks[4], ks[5], HIDDEN, OUT_DIM)
    return {"w1": w1, "b1": b1,
            "g1": jnp.ones((1, HIDDEN), jnp.float32),
            "be1": jnp.zeros((1, HIDDEN), jnp.float32),
            "w2": w2, "b2": b2,
            "g2": jnp.ones((1, HIDDEN), jnp.float32),
            "be2": jnp.zeros((1, HIDDEN), jnp.float32),
            "w3": w3, "b3": b3}


def _reference_forward(z, bits, params):
    """Plain-JAX f32 reference with the original (unfused, biased) math."""
    x = jnp.concatenate([z, bits], axis=1).astype(jnp.float32)

    def bn(h, g, b):
        mu = jnp.mean(h, axis=0, keepdims=True)
        var = jnp.mean((h - mu) * (h - mu), axis=0, keepdims=True)
        return (h - mu) * lax.rsqrt(var + BN_EPS) * g + b

    def lrelu(h):
        return jnp.where(h > 0, h, LEAK * h)

    h = lrelu(bn(x @ params["w1"] + params["b1"], params["g1"], params["be1"]))
    h = lrelu(bn(h @ params["w2"] + params["b2"], params["g2"], params["be2"]))
    return h @ params["w3"] + params["b3"]


def _matched_reference(z, bits, params):
    """Reference that mirrors the kernel math (bf16 MXU operands, fused one-pass BN)."""
    inv_n = 1.0 / z.shape[0]
    zb = z.astype(jnp.bfloat16)
    bb = bits.astype(jnp.bfloat16)
    w1a = params["w1"][:LATENT_DIM].astype(jnp.bfloat16)
    w1b = params["w1"][LATENT_DIM:].astype(jnp.bfloat16)
    w2 = params["w2"].astype(jnp.bfloat16)
    w3 = params["w3"].astype(jnp.bfloat16)

    h1 = (jnp.dot(zb, w1a, preferred_element_type=jnp.float32)
          + jnp.dot(bb, w1b, preferred_element_type=jnp.float32))
    s1 = jnp.sum(h1, axis=0, keepdims=True)
    q1 = jnp.sum(h1 * h1, axis=0, keepdims=True)
    sc1, sh1 = _bn_scale_shift(s1, q1, params["g1"], params["be1"], inv_n)
    a1 = _leaky(h1 * sc1 + sh1).astype(jnp.bfloat16)

    h2 = jnp.dot(a1, w2, preferred_element_type=jnp.float32)
    s2 = jnp.sum(h2, axis=0, keepdims=True)
    q2 = jnp.sum(h2 * h2, axis=0, keepdims=True)
    sc2, sh2 = _bn_scale_shift(s2, q2, params["g2"], params["be2"], inv_n)
    a2 = _leaky(h2 * sc2 + sh2).astype(jnp.bfloat16)
    return jnp.dot(a2, w3, preferred_element_type=jnp.float32) + params["b3"]


if __name__ == "__main__":
    key = jax.random.PRNGKey(0)
    k_param, k_z, k_bits = jax.random.split(key, 3)

    B = 32
    params = init_params(k_param)
    z = jax.random.normal(k_z, (B, LATENT_DIM), jnp.float32)
    bits = (jax.random.uniform(k_bits, (B, COND_DIM)) > 0.5).astype(jnp.float32)

    ref_f32 = _reference_forward(z, bits, params)
    ref_matched = _matched_reference(z, bits, params)

    # Small-batch fast path: whole batch resident, single kernel invocation.
    out_fused = jax.block_until_ready(generator_forward(z, bits, params))
    # Streaming 3-phase path: 2 batch tiles of 16 rows, full-batch BN stats.
    out_tiled = jax.block_until_ready(generator_forward(z, bits, params, tile_b=16))

    assert out_fused.shape == (B, OUT_DIM)
    assert out_tiled.shape == (B, OUT_DIM)
    # Tight check against a reference using identical bf16-matmul / fused-BN math.
    assert jnp.allclose(out_fused, ref_matched, atol=1e-4, rtol=1e-4), "fused vs matched ref"
    assert jnp.allclose(out_tiled, ref_matched, atol=1e-4, rtol=1e-4), "tiled vs matched ref"
    # Looser semantic check against the plain f32 PyTorch-equivalent math.
    assert jnp.allclose(out_fused, ref_f32, atol=5e-2, rtol=5e-2), "fused vs f32 ref"
    assert jnp.allclose(out_tiled, ref_f32, atol=5e-2, rtol=5e-2), "tiled vs f32 ref"

    print("KERNEL_OK")
</pallas_src>

<mosaic_0001>
module attributes {stable_mosaic.version = 11 : i64} {
  func.func @_onepass_kernel(%arg0: i32, %arg1: memref<32x10xbf16, #tpu.memory_space<vmem>>, %arg2: memref<32x16xbf16, #tpu.memory_space<vmem>>, %arg3: memref<10x64xbf16, #tpu.memory_space<vmem>>, %arg4: memref<16x64xbf16, #tpu.memory_space<vmem>>, %arg5: memref<1x64xf32, #tpu.memory_space<vmem>>, %arg6: memref<1x64xf32, #tpu.memory_space<vmem>>, %arg7: memref<64x64xbf16, #tpu.memory_space<vmem>>, %arg8: memref<1x64xf32, #tpu.memory_space<vmem>>, %arg9: memref<1x64xf32, #tpu.memory_space<vmem>>, %arg10: memref<64x2xbf16, #tpu.memory_space<vmem>>, %arg11: memref<1x2xf32, #tpu.memory_space<vmem>>, %arg12: memref<32x2xf32, #tpu.memory_space<vmem>>) attributes {dimension_semantics = [#tpu.dimension_semantics<arbitrary>], iteration_bounds = array<i64: 1>, scalar_prefetch = 0 : i64, scratch_operands = 0 : i64, tpu.core_type = #tpu.core_type<tc>, window_params = [{pipeline_mode = #tpu.pipeline_mode<synchronous>, transform_indices = @transform_0, window_bounds = array<i64: 32, 10>}, {pipeline_mode = #tpu.pipeline_mode<synchronous>, transform_indices = @transform_1, window_bounds = array<i64: 32, 16>}, {pipeline_mode = #tpu.pipeline_mode<synchronous>, transform_indices = @transform_2, window_bounds = array<i64: 10, 64>}, {pipeline_mode = #tpu.pipeline_mode<synchronous>, transform_indices = @transform_3, window_bounds = array<i64: 16, 64>}, {pipeline_mode = #tpu.pipeline_mode<synchronous>, transform_indices = @transform_4, window_bounds = array<i64: 1, 64>}, {pipeline_mode = #tpu.pipeline_mode<synchronous>, transform_indices = @transform_5, window_bounds = array<i64: 1, 64>}, {pipeline_mode = #tpu.pipeline_mode<synchronous>, transform_indices = @transform_6, window_bounds = array<i64: 64, 64>}, {pipeline_mode = #tpu.pipeline_mode<synchronous>, transform_indices = @transform_7, window_bounds = array<i64: 1, 64>}, {pipeline_mode = #tpu.pipeline_mode<synchronous>, transform_indices = @transform_8, window_bounds = array<i64: 1, 64>}, {pipeline_mode = #tpu.pipeline_mode<synchronous>, transform_indices = @transform_9, window_bounds = array<i64: 64, 2>}, {pipeline_mode = #tpu.pipeline_mode<synchronous>, transform_indices = @transform_10, window_bounds = array<i64: 1, 2>}, {pipeline_mode = #tpu.pipeline_mode<synchronous>, transform_indices = @transform_11, window_bounds = array<i64: 32, 2>}]} {
    %c0 = arith.constant 0 : index
    %c0_0 = arith.constant 0 : index
    %0 = vector.load %arg1[%c0, %c0_0] : memref<32x10xbf16, #tpu.memory_space<vmem>>, vector<32x10xbf16>
    %c0_1 = arith.constant 0 : index
    %c0_2 = arith.constant 0 : index
    %1 = vector.load %arg3[%c0_1, %c0_2] : memref<10x64xbf16, #tpu.memory_space<vmem>>, vector<10x64xbf16>
    %cst = arith.constant dense<0.000000e+00> : vector<32x64xf32>
    %2 = tpu.matmul %0, %1, %cst {dimension_numbers = #tpu.dot_dimension_numbers<[1], [0], [0], [1], [0, 0, 1, 1], [], []>} : vector<32x10xbf16>, vector<10x64xbf16>, vector<32x64xf32> -> vector<32x64xf32>
    %c0_3 = arith.constant 0 : index
    %c0_4 = arith.constant 0 : index
    %3 = vector.load %arg2[%c0_3, %c0_4] : memref<32x16xbf16, #tpu.memory_space<vmem>>, vector<32x16xbf16>
    %c0_5 = arith.constant 0 : index
    %c0_6 = arith.constant 0 : index
    %4 = vector.load %arg4[%c0_5, %c0_6] : memref<16x64xbf16, #tpu.memory_space<vmem>>, vector<16x64xbf16>
    %cst_7 = arith.constant dense<0.000000e+00> : vector<32x64xf32>
    %5 = tpu.matmul %3, %4, %cst_7 {dimension_numbers = #tpu.dot_dimension_numbers<[1], [0], [0], [1], [0, 0, 1, 1], [], []>} : vector<32x16xbf16>, vector<16x64xbf16>, vector<32x64xf32> -> vector<32x64xf32>
    %6 = arith.addf %2, %5 : vector<32x64xf32>
    %cst_8 = arith.constant dense<0.000000e+00> : vector<64xf32>
    %7 = vector.multi_reduction <add>, %6, %cst_8 [0] : vector<32x64xf32> to vector<64xf32>
    %8 = vector.shape_cast %7 : vector<64xf32> to vector<1x64xf32>
    %9 = arith.mulf %6, %6 : vector<32x64xf32>
    %cst_9 = arith.constant dense<0.000000e+00> : vector<64xf32>
    %10 = vector.multi_reduction <add>, %9, %cst_9 [0] : vector<32x64xf32> to vector<64xf32>
    %11 = vector.shape_cast %10 : vector<64xf32> to vector<1x64xf32>
    %c0_10 = arith.constant 0 : index
    %c0_11 = arith.constant 0 : index
    %12 = vector.load %arg5[%c0_10, %c0_11] : memref<1x64xf32, #tpu.memory_space<vmem>>, vector<1x64xf32>
    %c0_12 = arith.constant 0 : index
    %c0_13 = arith.constant 0 : index
    %13 = vector.load %arg6[%c0_12, %c0_13] : memref<1x64xf32, #tpu.memory_space<vmem>>, vector<1x64xf32>
    %cst_14 = arith.constant 3.125000e-02 : f32
    %14 = vector.broadcast %cst_14 : f32 to vector<1x64xf32>
    %15 = arith.mulf %8, %14 : vector<1x64xf32>
    %cst_15 = arith.constant 3.125000e-02 : f32
    %16 = vector.broadcast %cst_15 : f32 to vector<1x64xf32>
    %17 = arith.mulf %11, %16 : vector<1x64xf32>
    %18 = arith.mulf %15, %15 : vector<1x64xf32>
    %19 = arith.subf %17, %18 : vector<1x64xf32>
    %cst_16 = arith.constant 9.99999974E-6 : f32
    %20 = vector.broadcast %cst_16 : f32 to vector<1x64xf32>
    %21 = arith.addf %19, %20 : vector<1x64xf32>
    %22 = math.rsqrt %21 : vector<1x64xf32>
    %23 = arith.mulf %12, %22 : vector<1x64xf32>
    %24 = arith.mulf %15, %23 : vector<1x64xf32>
    %25 = arith.subf %13, %24 : vector<1x64xf32>
    %26 = vector.broadcast %23 : vector<1x64xf32> to vector<32x64xf32>
    %27 = arith.mulf %6, %26 : vector<32x64xf32>
    %28 = vector.broadcast %25 : vector<1x64xf32> to vector<32x64xf32>
    %29 = arith.addf %27, %28 : vector<32x64xf32>
    %cst_17 = arith.constant 2.000000e-01 : f32
    %30 = vector.broadcast %cst_17 : f32 to vector<32x64xf32>
    %31 = arith.mulf %30, %29 : vector<32x64xf32>
    %32 = arith.maximumf %29, %31 : vector<32x64xf32>
    %33 = arith.truncf %32 : vector<32x64xf32> to vector<32x64xbf16>
    %c0_18 = arith.constant 0 : index
    %c0_19 = arith.constant 0 : index
    %34 = vector.load %arg7[%c0_18, %c0_19] : memref<64x64xbf16, #tpu.memory_space<vmem>>, vector<64x64xbf16>
    %cst_20 = arith.constant dense<0.000000e+00> : vector<32x64xf32>
    %35 = tpu.matmul %33, %34, %cst_20 {dimension_numbers = #tpu.dot_dimension_numbers<[1], [0], [0], [1], [0, 0, 1, 1], [], []>} : vector<32x64xbf16>, vector<64x64xbf16>, vector<32x64xf32> -> vector<32x64xf32>
    %cst_21 = arith.constant dense<0.000000e+00> : vector<64xf32>
    %36 = vector.multi_reduction <add>, %35, %cst_21 [0] : vector<32x64xf32> to vector<64xf32>
    %37 = vector.shape_cast %36 : vector<64xf32> to vector<1x64xf32>
    %38 = arith.mulf %35, %35 : vector<32x64xf32>
    %cst_22 = arith.constant dense<0.000000e+00> : vector<64xf32>
    %39 = vector.multi_reduction <add>, %38, %cst_22 [0] : vector<32x64xf32> to vector<64xf32>
    %40 = vector.shape_cast %39 : vector<64xf32> to vector<1x64xf32>
    %c0_23 = arith.constant 0 : index
    %c0_24 = arith.constant 0 : index
    %41 = vector.load %arg8[%c0_23, %c0_24] : memref<1x64xf32, #tpu.memory_space<vmem>>, vector<1x64xf32>
    %c0_25 = arith.constant 0 : index
    %c0_26 = arith.constant 0 : index
    %42 = vector.load %arg9[%c0_25, %c0_26] : memref<1x64xf32, #tpu.memory_space<vmem>>, vector<1x64xf32>
    %cst_27 = arith.constant 3.125000e-02 : f32
    %43 = vector.broadcast %cst_27 : f32 to vector<1x64xf32>
    %44 = arith.mulf %37, %43 : vector<1x64xf32>
    %cst_28 = arith.constant 3.125000e-02 : f32
    %45 = vector.broadcast %cst_28 : f32 to vector<1x64xf32>
    %46 = arith.mulf %40, %45 : vector<1x64xf32>
    %47 = arith.mulf %44, %44 : vector<1x64xf32>
    %48 = arith.subf %46, %47 : vector<1x64xf32>
    %cst_29 = arith.constant 9.99999974E-6 : f32
    %49 = vector.broadcast %cst_29 : f32 to vector<1x64xf32>
    %50 = arith.addf %48, %49 : vector<1x64xf32>
    %51 = math.rsqrt %50 : vector<1x64xf32>
    %52 = arith.mulf %41, %51 : vector<1x64xf32>
    %53 = arith.mulf %44, %52 : vector<1x64xf32>
    %54 = arith.subf %42, %53 : vector<1x64xf32>
    %55 = vector.broadcast %52 : vector<1x64xf32> to vector<32x64xf32>
    %56 = arith.mulf %35, %55 : vector<32x64xf32>
    %57 = vector.broadcast %54 : vector<1x64xf32> to vector<32x64xf32>
    %58 = arith.addf %56, %57 : vector<32x64xf32>
    %cst_30 = arith.constant 2.000000e-01 : f32
    %59 = vector.broadcast %cst_30 : f32 to vector<32x64xf32>
    %60 = arith.mulf %59, %58 : vector<32x64xf32>
    %61 = arith.maximumf %58, %60 : vector<32x64xf32>
    %62 = arith.truncf %61 : vector<32x64xf32> to vector<32x64xbf16>
    %c0_31 = arith.constant 0 : index
    %c0_32 = arith.constant 0 : index
    %63 = vector.load %arg10[%c0_31, %c0_32] : memref<64x2xbf16, #tpu.memory_space<vmem>>, vector<64x2xbf16>
    %cst_33 = arith.constant dense<0.000000e+00> : vector<32x2xf32>
    %64 = tpu.matmul %62, %63, %cst_33 {dimension_numbers = #tpu.dot_dimension_numbers<[1], [0], [0], [1], [0, 0, 1, 1], [], []>} : vector<32x64xbf16>, vector<64x2xbf16>, vector<32x2xf32> -> vector<32x2xf32>
    %c0_34 = arith.constant 0 : index
    %c0_35 = arith.constant 0 : index
    %65 = vector.load %arg11[%c0_34, %c0_35] : memref<1x2xf32, #tpu.memory_space<vmem>>, vector<1x2xf32>
    %66 = vector.broadcast %65 : vector<1x2xf32> to vector<32x2xf32>
    %67 = arith.addf %64, %66 : vector<32x2xf32>
    %c0_36 = arith.constant 0 : index
    %c0_37 = arith.constant 0 : index
    %68 = vector.load %arg12[%c0_36, %c0_37] : memref<32x2xf32, #tpu.memory_space<vmem>>, vector<32x2xf32>
    tpu.vector_store %arg12[%c0_36, %c0_37], %67 {strides = array<i32>} : memref<32x2xf32, #tpu.memory_space<vmem>>, vector<32x2xf32>,
    return
  }
  func.func @transform_0(%arg0: i32) -> (i32, i32) {
    %c0_i32 = arith.constant 0 : i32
    %c0_i32_0 = arith.constant 0 : i32
    %c0_i32_1 = arith.constant 0 : i32
    return %c0_i32, %c0_i32_0 : i32, i32
  }
  func.func @transform_1(%arg0: i32) -> (i32, i32) {
    %c0_i32 = arith.constant 0 : i32
    %c0_i32_0 = arith.constant 0 : i32
    %c0_i32_1 = arith.constant 0 : i32
    return %c0_i32, %c0_i32_0 : i32, i32
  }
  func.func @transform_2(%arg0: i32) -> (i32, i32) {
    %c0_i32 = arith.constant 0 : i32
    %c0_i32_0 = arith.constant 0 : i32
    %c0_i32_1 = arith.constant 0 : i32
    return %c0_i32, %c0_i32_0 : i32, i32
  }
  func.func @transform_3(%arg0: i32) -> (i32, i32) {
    %c0_i32 = arith.constant 0 : i32
    %c0_i32_0 = arith.constant 0 : i32
    %c0_i32_1 = arith.constant 0 : i32
    return %c0_i32, %c0_i32_0 : i32, i32
  }
  func.func @transform_4(%arg0: i32) -> (i32, i32) {
    %c0_i32 = arith.constant 0 : i32
    %c0_i32_0 = arith.constant 0 : i32
    %c0_i32_1 = arith.constant 0 : i32
    return %c0_i32, %c0_i32_0 : i32, i32
  }
  func.func @transform_5(%arg0: i32) -> (i32, i32) {
    %c0_i32 = arith.constant 0 : i32
    %c0_i32_0 = arith.constant 0 : i32
    %c0_i32_1 = arith.constant 0 : i32
    return %c0_i32, %c0_i32_0 : i32, i32
  }
  func.func @transform_6(%arg0: i32) -> (i32, i32) {
    %c0_i32 = arith.constant 0 : i32
    %c0_i32_0 = arith.constant 0 : i32
    %c0_i32_1 = arith.constant 0 : i32
    return %c0_i32, %c0_i32_0 : i32, i32
  }
  func.func @transform_7(%arg0: i32) -> (i32, i32) {
    %c0_i32 = arith.constant 0 : i32
    %c0_i32_0 = arith.constant 0 : i32
    %c0_i32_1 = arith.constant 0 : i32
    return %c0_i32, %c0_i32_0 : i32, i32
  }
  func.func @transform_8(%arg0: i32) -> (i32, i32) {
    %c0_i32 = arith.constant 0 : i32
    %c0_i32_0 = arith.constant 0 : i32
    %c0_i32_1 = arith.constant 0 : i32
    return %c0_i32, %c0_i32_0 : i32, i32
  }
  func.func @transform_9(%arg0: i32) -> (i32, i32) {
    %c0_i32 = arith.constant 0 : i32
    %c0_i32_0 = arith.constant 0 : i32
    %c0_i32_1 = arith.constant 0 : i32
    return %c0_i32, %c0_i32_0 : i32, i32
  }
  func.func @transform_10(%arg0: i32) -> (i32, i32) {
    %c0_i32 = arith.constant 0 : i32
    %c0_i32_0 = arith.constant 0 : i32
    %c0_i32_1 = arith.constant 0 : i32
    return %c0_i32, %c0_i32_0 : i32, i32
  }
  func.func @transform_11(%arg0: i32) -> (i32, i32) {
    %c0_i32 = arith.constant 0 : i32
    %c0_i32_0 = arith.constant 0 : i32
    %c0_i32_1 = arith.constant 0 : i32
    return %c0_i32, %c0_i32_0 : i32, i32
  }
}

</mosaic_0001>

<bundles_post_ra>
// kernel: tpu_custom_call.1
= control target key start
LH: loop header
LB: loop body
LE: loop exit
PB: predicated region body
PF: predicated region fallthrough
CT: control target
= control target key end

     0   :  { %vm145_vm0 = vcmask 1044480   ;;  %vm67_vm1 = vcmask 130048   ;;  %vm138_vm2 = vcmask 80896   ;;  %vm198_vm3 = vcmask 523264   ;;  %s786_s3 = inlined_call_operand.vmem [shape: bf16[16,64], index: 3, kind: input, shape index: {}]   ;;  %s787_s2 = inlined_call_operand.vmem [shape: bf16[10,64], index: 2, kind: input, shape index: {}]   ;;  %s788_s1 = inlined_call_operand.vmem [shape: bf16[32,16], index: 1, kind: input, shape index: {}]   ;;  %s789_s0 = inlined_call_operand.vmem [shape: bf16[32,10], index: 0, kind: input, shape index: {}]   ;;  %s790_s6 = inlined_call_operand.vmem [shape: bf16[64,64], index: 6, kind: input, shape index: {}]   ;;  %s791_s4 = inlined_call_operand.vmem [shape: f32[1,64], index: 4, kind: input, shape index: {}]   ;;  %s792_s5 = inlined_call_operand.vmem [shape: f32[1,64], index: 5, kind: input, shape index: {}]   ;;  %s793_s9 = inlined_call_operand.vmem [shape: bf16[64,2], index: 9, kind: input, shape index: {}]   ;;  %s794_s7 = inlined_call_operand.vmem [shape: f32[1,64], index: 7, kind: input, shape index: {}]   ;;  %s795_s8 = inlined_call_operand.vmem [shape: f32[1,64], index: 8, kind: input, shape index: {}]   ;;  %s796_s10 = inlined_call_operand.vmem [shape: f32[1,2], index: 10, kind: input, shape index: {}]   ;;  %s797_s11 = inlined_call_operand.vmem [shape: f32[32,2], index: 11, kind: output, shape index: {}]  }
   0x1   :  { %v613_v0 = vld [vmem:[%s786_s3] sm:$0xff]   ;;  %v617_v5 = vld [vmem:[%s788_s1 + $0x8] sm:$0xff]   ;;  %v621_v9 = vld [vmem:[%s790_s6 + $0x10] sm:$0xff]   ;;  %v241_v58 = vlaneseq  ;;  %vm522_vm4 = vcmask 15360  }
   0x2   :  { %v614_v1 = vld [vmem:[%s787_s2] sm:$0x1f]   ;;  %572 = vmatprep.subr.bf16.mxu1 %v613_v0  ;;  %v618_v6 = vld [vmem:[%s789_s0 + $0x8] sm:$0xff]   ;;  %v622_v10 = vld [vmem:[%s790_s6 + $0x18] sm:$0xff]  }
   0x3   :  { %v615_v2 = vld [vmem:[%s788_s1] sm:$0xff]   ;;  %612 = vmatprep.subr.msk.bf16.mxu0 %vm145_vm0, %v614_v1  ;;  %573 = vmatpush3.bf16.msra.mxu1 %v613_v0  ;;  %v147_v3 = vsel %vm145_vm0, %v614_v1, 0  ;;  %v620_v8 = vld [vmem:[%s790_s6 + $0x8] sm:$0xff]   ;;  %v242_v59 = vshrl.u32 %v241_v58, 7 }
   0x4   :  { %v616_v4 = vld [vmem:[%s789_s0] sm:$0xff]   ;;  %579 = vmatpush3.bf16.msra.mxu0 %v147_v3  ;;  %574 = vmatprep.mubr.msk.bf16.mxu1 %vm67_vm1, %v615_v2 }
   0x5   :  { %580 = vmatprep.mubr.msk.bf16.mxu0 %vm138_vm2, %v616_v4  ;;  %v619_v7 = vld [vmem:[%s790_s6] sm:$0xff]   ;;  %v732_v61 = vsub.s32 0, %v242_v59 }
   0x6   :  { %575 = vmatmul.mubr.msk.bf16.vlgmr.msra.gmra.mrb[0].mxu1 %vm67_vm1, %v617_v5  ;;  %584 = vmatprep.subr.bf16.mxu1 %v619_v7  ;;  %v229_v60 = vld [vmem:[%s791_s4] sm:$0x1] }
   0x7   :  { %581 = vmatmul.mubr.msk.bf16.vlgmr.msra.gmra.mrb[0].mxu0 %vm138_vm2, %v618_v6  ;;  %585 = vmatpush3.bf16.msra.mxu1 %v619_v7  ;;  %v230_v0 = vld [vmem:[%s792_s5] sm:$0x1] }
   0x8   :  { %586 = vmatprep.subr.bf16.mxu1 %v620_v8 }
   0xb   :  { %587 = vmatpush3.bf16.msra.mxu1 %v620_v8 }
   0xc   :  { %588 = vmatprep.subr.bf16.mxu1 %v621_v9 }
   0xf   :  { %589 = vmatpush3.bf16.msra.mxu1 %v621_v9 }
  0x10   :  { %590 = vmatprep.subr.bf16.mxu1 %v622_v10 }
  0x13   :  { %591 = vmatpush3.bf16.msra.mxu1 %v622_v10 }
  0xd9   :  { %v576_v11 = vpop.f32.mrb[0].mxu1 }
  0xda   :  { %v582_v12 = vpop.f32.mrb[0].mxu0  ;;  %v108_v13 = vpop.f32.mrb[1].mxu1 }
  0xdb   :  { %v192_v14 = vadd.f32 %v582_v12, %v576_v11  ;;  %v183_v15 = vpop.f32.mrb[1].mxu0  ;;  %v577_v16 = vpop.f32.mrb[2].mxu1 }
  0xdc   :  { %v184_v17 = vadd.f32 %v183_v15, %v108_v13  ;;  %v583_v18 = vpop.f32.mrb[2].mxu0  ;;  %v111_v19 = vpop.f32.mrb[3].mxu1 }
  0xdd   :  { %v195_v20 = vadd.f32 %v583_v18, %v577_v16  ;;  %v186_v21 = vpop.f32.mrb[3].mxu0  ;;  %v214_v24 = vmul.f32 %v192_v14, %v192_v14  ;;  %v202_v29 = vsel %vm198_vm3, %v192_v14, 0.0 }
  0xde   :  { %v212_v22 = vmul.f32 %v184_v17, %v184_v17  ;;  %v187_v23 = vadd.f32 %v186_v21, %v111_v19  ;;  %v199_v25 = vsel %vm198_vm3, %v184_v17, 0.0 }
  0xdf   :  { %v215_v31 = vmul.f32 %v195_v20, %v195_v20  ;;  %v219_v35 = vsel %vm198_vm3, %v214_v24, 0.0  ;;  %v204_v36 = vsel %vm198_vm3, %v195_v20, 0.0 }
  0xe0   :  { %v200_v26 = vsel %vm198_vm3, %v187_v23, 0.0  ;;  %v213_v27 = vmul.f32 %v187_v23, %v187_v23  ;;  %v216_v30 = vsel %vm198_vm3, %v212_v22, 0.0 }
  0xe1   :  { %v201_v28 = vadd.f32 %v200_v26, %v199_v25  ;;  %v221_v39 = vsel %vm198_vm3, %v215_v31, 0.0 }
  0xe2   :  { %v217_v32 = vsel %vm198_vm3, %v213_v27, 0.0 }
  0xe3   :  { %v203_v33 = vadd.f32 %v202_v29, %v201_v28  ;;  %v218_v34 = vadd.f32 %v217_v32, %v216_v30 }
  0xe5   :  { %v205_v37 = vadd.f32 %v204_v36, %v203_v33  ;;  %v220_v38 = vadd.f32 %v219_v35, %v218_v34 }
  0xe7   :  { %v206_v40 = vrot.slane %v205_v37, 4  ;;  %v222_v41 = vadd.f32 %v221_v39, %v220_v38 }
  0xe9   :  { %v207_v42 = vadd.f32 %v206_v40, %v205_v37  ;;  %v223_v43 = vrot.slane %v222_v41, 4 }
  0xeb   :  { %v208_v44 = vrot.slane %v207_v42, 2  ;;  %v224_v45 = vadd.f32 %v223_v43, %v222_v41 }
  0xed   :  { %v209_v46 = vadd.f32 %v208_v44, %v207_v42  ;;  %v225_v47 = vrot.slane %v224_v45, 2 }
  0xef   :  { %v210_v48 = vrot.slane %v209_v46, 1  ;;  %v226_v49 = vadd.f32 %v225_v47, %v224_v45 }
  0xf1   :  { %v211_v50 = vadd.f32 %v210_v48, %v209_v46  ;;  %v227_v51 = vrot.slane %v226_v49, 1 }
  0xf3   :  { %v228_v52 = vadd.f32 %v227_v51, %v226_v49  ;;  %v231_v53 = vmul.f32 0.03125, %v211_v50 }
  0xf5   :  { %v232_v54 = vmul.f32 0.03125, %v228_v52  ;;  %v233_v55 = vmul.f32 %v231_v53, %v231_v53 }
  0xf7   :  { %v234_v56 = vsub.f32 %v232_v54, %v233_v55 }
  0xf9   :  { %v235_v57 = vadd.f32 1e-05, %v234_v56 }
  0xfb   :  { %627 = vrsqrt.f32 %v235_v57 }
 0x105   :  { %v628_v62 = vpop.eup %627 }
 0x106   :  { %v237_v63 = vmul.f32 %v628_v62, %v229_v60 }
 0x108   :  { %v238_v1 = vmul.f32 %v237_v63, %v231_v53  ;;  %v244_v2 = vrot.slane %v237_v63, %v732_v61 }
 0x10a   :  { %v239_v3 = vsub.f32 %v230_v0, %v238_v1  ;;  %v247_v4 = vmul.f32 %v244_v2, %v187_v23  ;;  %v246_v5 = vmul.f32 %v244_v2, %v184_v17  ;;  %v248_v6 = vmul.f32 %v244_v2, %v192_v14  ;;  %v623_v14 = vld [vmem:[%s793_s9] sm:$0xff]   ;;  %v624_v17 = vld [vmem:[%s793_s9 + $0x8] sm:$0xff]   ;;  %v626_v23 = vld [vmem:[%s793_s9 + $0x18] sm:$0xff]  }
 0x10b   :  { %v249_v7 = vmul.f32 %v244_v2, %v195_v20  ;;  %596 = vmatprep.subr.bf16.mxu0 %v623_v14  ;;  %v625_v20 = vld [vmem:[%s793_s9 + $0x10] sm:$0xff]  }
 0x10c   :  { %v254_v8 = vrot.slane %v239_v3, %v732_v61  ;;  %597 = vmatpush3.bf16.msra.mxu0 %v623_v14  ;;  %v387_v3 = vld [vmem:[%s794_s7] sm:$0x1] }
 0x10d   :  { %598 = vmatprep.subr.bf16.mxu0 %v624_v17 }
 0x10e   :  { %v257_v9 = vadd.f32 %v254_v8, %v247_v4  ;;  %v256_v10 = vadd.f32 %v254_v8, %v246_v5  ;;  %v258_v11 = vadd.f32 %v254_v8, %v248_v6  ;;  %v259_v12 = vadd.f32 %v254_v8, %v249_v7  ;;  %v388_v6 = vld [vmem:[%s795_s8] sm:$0x1] }
 0x110   :  { %v261_v13 = vmul.f32 0.2, %v257_v9  ;;  %v260_v15 = vmul.f32 0.2, %v256_v10  ;;  %v262_v16 = vmul.f32 0.2, %v258_v11  ;;  %599 = vmatpush3.bf16.msra.mxu0 %v624_v17 }
 0x111   :  { %v263_v18 = vmul.f32 0.2, %v259_v12  ;;  %600 = vmatprep.subr.bf16.mxu0 %v625_v20 }
 0x112   :  { %v265_v19 = vmax.f32 %v257_v9, %v261_v13  ;;  %v264_v21 = vmax.f32 %v256_v10, %v260_v15  ;;  %v266_v22 = vmax.f32 %v258_v11, %v262_v16 }
 0x113   :  { %v267_v24 = vmax.f32 %v259_v12, %v263_v18 }
 0x114   :  { %v268_v25 = vpack.c.bf16 %v265_v19, %v264_v21  ;;  %601 = vmatpush3.bf16.msra.mxu0 %v625_v20 }
 0x115   :  { %v269_v26 = vpack.c.bf16 %v267_v24, %v266_v22  ;;  %602 = vmatprep.subr.bf16.mxu0 %v626_v23 }
 0x116   :  { %592 = vmatprep.mubr.msk.bf16.mxu1 %vm198_vm3, %v268_v25 }
 0x117   :  { %593 = vmatmul.mubr.msk.bf16.vlgmr.msra.gmra.mrb[4].mxu1 %vm198_vm3, %v269_v26 }
 0x118   :  { %603 = vmatpush3.bf16.msra.mxu0 %v626_v23 }
 0x1ea   :  { %v594_v27 = vpop.f32.mrb[4].mxu1 }
 0x1eb   :  { %v342_v28 = vpop.f32.mrb[5].mxu1  ;;  %v372_v32 = vmul.f32 %v594_v27, %v594_v27  ;;  %v360_v37 = vsel %vm198_vm3, %v594_v27, 0.0 }
 0x1ec   :  { %v370_v29 = vmul.f32 %v342_v28, %v342_v28  ;;  %v595_v30 = vpop.f32.mrb[6].mxu1  ;;  %v357_v33 = vsel %vm198_vm3, %v342_v28, 0.0 }
 0x1ed   :  { %v345_v31 = vpop.f32.mrb[7].mxu1  ;;  %v373_v39 = vmul.f32 %v595_v30, %v595_v30  ;;  %v377_v43 = vsel %vm198_vm3, %v372_v32, 0.0  ;;  %v362_v44 = vsel %vm198_vm3, %v595_v30, 0.0 }
 0x1ee   :  { %v358_v34 = vsel %vm198_vm3, %v345_v31, 0.0  ;;  %v371_v35 = vmul.f32 %v345_v31, %v345_v31  ;;  %v374_v38 = vsel %vm198_vm3, %v370_v29, 0.0 }
 0x1ef   :  { %v359_v36 = vadd.f32 %v358_v34, %v357_v33  ;;  %v379_v47 = vsel %vm198_vm3, %v373_v39, 0.0 }
 0x1f0   :  { %v375_v40 = vsel %vm198_vm3, %v371_v35, 0.0 }
 0x1f1   :  { %v361_v41 = vadd.f32 %v360_v37, %v359_v36  ;;  %v376_v42 = vadd.f32 %v375_v40, %v374_v38 }
 0x1f3   :  { %v363_v45 = vadd.f32 %v362_v44, %v361_v41  ;;  %v378_v46 = vadd.f32 %v377_v43, %v376_v42 }
 0x1f5   :  { %v364_v48 = vrot.slane %v363_v45, 4  ;;  %v380_v49 = vadd.f32 %v379_v47, %v378_v46 }
 0x1f7   :  { %v365_v50 = vadd.f32 %v364_v48, %v363_v45  ;;  %v381_v51 = vrot.slane %v380_v49, 4 }
 0x1f9   :  { %v366_v52 = vrot.slane %v365_v50, 2  ;;  %v382_v53 = vadd.f32 %v381_v51, %v380_v49 }
 0x1fb   :  { %v367_v54 = vadd.f32 %v366_v52, %v365_v50  ;;  %v383_v55 = vrot.slane %v382_v53, 2 }
 0x1fd   :  { %v368_v56 = vrot.slane %v367_v54, 1  ;;  %v384_v57 = vadd.f32 %v383_v55, %v382_v53 }
 0x1ff   :  { %v369_v58 = vadd.f32 %v368_v56, %v367_v54  ;;  %v385_v59 = vrot.slane %v384_v57, 1 }
 0x201   :  { %v386_v60 = vadd.f32 %v385_v59, %v384_v57  ;;  %v389_v62 = vmul.f32 0.03125, %v369_v58 }
 0x203   :  { %v390_v63 = vmul.f32 0.03125, %v386_v60  ;;  %v391_v0 = vmul.f32 %v389_v62, %v389_v62 }
 0x205   :  { %v392_v1 = vsub.f32 %v390_v63, %v391_v0 }
 0x207   :  { %v393_v2 = vadd.f32 1e-05, %v392_v1 }
 0x209   :  { %629 = vrsqrt.f32 %v393_v2 }
 0x213   :  { %v630_v4 = vpop.eup %629 }
 0x214   :  { %v395_v5 = vmul.f32 %v630_v4, %v387_v3 }
 0x216   :  { %v396_v7 = vmul.f32 %v395_v5, %v389_v62  ;;  %v402_v8 = vrot.slane %v395_v5, %v732_v61 }
 0x218   :  { %v397_v9 = vsub.f32 %v388_v6, %v396_v7  ;;  %v405_v10 = vmul.f32 %v402_v8, %v345_v31  ;;  %v406_v11 = vmul.f32 %v594_v27, %v402_v8  ;;  %v407_v12 = vmul.f32 %v595_v30, %v402_v8 }
 0x219   :  { %v404_v13 = vmul.f32 %v402_v8, %v342_v28 }
 0x21a   :  { %v412_v15 = vrot.slane %v397_v9, %v732_v61  ;;  %v547_v61 = vld [vmem:[%s796_s10] ss:$0 sm:$0xff] }
 0x21c   :  { %v415_v16 = vadd.f32 %v412_v15, %v405_v10  ;;  %v414_v18 = vadd.f32 %v412_v15, %v404_v13  ;;  %v416_v19 = vadd.f32 %v412_v15, %v406_v11  ;;  %v417_v21 = vadd.f32 %v412_v15, %v407_v12 }
 0x21e   :  { %v419_v22 = vmul.f32 0.2, %v415_v16  ;;  %v418_v24 = vmul.f32 0.2, %v414_v18  ;;  %v420_v25 = vmul.f32 0.2, %v416_v19 }
 0x21f   :  { %v421_v26 = vmul.f32 0.2, %v417_v21 }
 0x220   :  { %v423_v14 = vmax.f32 %v415_v16, %v419_v22  ;;  %v422_v17 = vmax.f32 %v414_v18, %v418_v24  ;;  %v424_v20 = vmax.f32 %v416_v19, %v420_v25 }
 0x221   :  { %v425_v23 = vmax.f32 %v417_v21, %v421_v26 }
 0x222   :  { %v426_v29 = vpack.c.bf16 %v423_v14, %v422_v17 }
 0x223   :  { %v427_v32 = vpack.c.bf16 %v425_v23, %v424_v20 }
 0x224   :  { %604 = vmatprep.mubr.msk.bf16.mxu0 %vm198_vm3, %v426_v29 }
 0x225   :  { %605 = vmatmul.mubr.msk.bf16.vlgmr.msra.gmra.mrb[4].mxu0 %vm198_vm3, %v427_v32 }
 0x2f8   :  { %v606_v27 = vpop.f32.mrb[4].mxu0 }
 0x2f9   :  { %v516_v28 = vadd.f32 %v606_v27, %v547_v61  ;;  %v507_v30 = vpop.f32.mrb[5].mxu0 }
 0x2fa   :  { %v508_v31 = vadd.f32 %v547_v61, %v507_v30  ;;  %v607_v33 = vpop.f32.mrb[6].mxu0 }
 0x2fb   :  { %525 = vst.msk [vmem:[%s797_s11 + $0x10] sm:$0xff] %vm522_vm4, %v516_v28  ;;  %v519_v34 = vadd.f32 %v607_v33, %v547_v61  ;;  %v510_v35 = vpop.f32.mrb[7].mxu0 }
 0x2fc   :  { %523 = vst.msk [vmem:[%s797_s11] sm:$0xff] %vm522_vm4, %v508_v31  ;;  %v511_v36 = vadd.f32 %v547_v61, %v510_v35 }
 0x2fd   :  { %526 = vst.msk [vmem:[%s797_s11 + $0x18] sm:$0xff] %vm522_vm4, %v519_v34 }
 0x2fe   :  { %524 = vst.msk [vmem:[%s797_s11 + $0x8] sm:$0xff] %vm522_vm4, %v511_v36 }

</bundles_post_ra>
